<compile_context>
chip_gen: v7x
topology: tpu7x:2x2x1
jax: 0.10.0
libtpu: 0.0.40
codegen_flags: <defaults>
</compile_context>

<pallas_src>
import jax
import jax.numpy as jnp
from jax.experimental import pallas as pl
from jax.experimental.pallas import tpu as pltpu

# Below this many bytes the Pallas launch + DMA-descriptor overhead dominates
# the copy (perf review: "a few MiB") -> return feat and let XLA / donation
# make the identity free.
_FAST_PATH_BYTES = 4 * 1024 * 1024


def _hbm_copy_kernel(x_hbm, o_hbm, sem):
    # Single contiguous HBM->HBM DMA: no VMEM staging, no per-grid-step
    # overhead, no tiling constraints.  One descriptor hits the HBM copy
    # roofline on v5e / v6e / v7x alike.
    cp = pltpu.make_async_copy(x_hbm, o_hbm, sem)
    cp.start()
    cp.wait()


def temp_print_shape_forward(feat, *, donate=False, force_kernel=False):
    """Pallas identity forward (TempPrintShape.forward). Returns feat unchanged.

    donate: set input_output_aliases={0: 0} only when the caller actually
        donates `feat` at the jit boundary (otherwise XLA inserts a defensive
        copy and HBM traffic doubles).
    force_kernel: run the Pallas DMA path even for tiny inputs (testing).
    """
    nbytes = feat.size * jnp.dtype(feat.dtype).itemsize

    # Fast path: tiny / empty / scalar tensors -- identity is free in XLA and
    # strictly faster than launching a kernel.
    if feat.ndim == 0 or feat.size == 0 or (nbytes < _FAST_PATH_BYTES and not force_kernel):
        return feat

    extra_kwargs = {}
    if donate:
        extra_kwargs["input_output_aliases"] = {0: 0}

    return pl.pallas_call(
        _hbm_copy_kernel,
        out_shape=jax.ShapeDtypeStruct(feat.shape, feat.dtype),
        in_specs=[pl.BlockSpec(memory_space=pl.ANY)],
        out_specs=pl.BlockSpec(memory_space=pl.ANY),
        scratch_shapes=[pltpu.SemaphoreType.DMA],
        cost_estimate=pl.CostEstimate(
            flops=0, transcendentals=0, bytes_accessed=2 * nbytes
        ),
        **extra_kwargs,
    )(feat)


if __name__ == "__main__":
    key = jax.random.PRNGKey(0)
    k1, k2 = jax.random.split(key)

    # Module-consistent tiny NCHW feature map (8 KiB): takes the fast path.
    x_small = jax.random.normal(k1, (2, 4, 16, 16), dtype=jnp.float32)
    y_small = jax.block_until_ready(temp_print_shape_forward(x_small))
    assert y_small.shape == x_small.shape
    assert y_small.dtype == x_small.dtype
    assert bool(jnp.all(y_small == x_small))

    # Exercise the Pallas HBM->HBM DMA path explicitly on a small feature map
    # (256 KiB, force_kernel=True so we don't need a multi-MiB test tensor).
    x_big = jax.random.normal(k2, (2, 8, 64, 64), dtype=jnp.float32)
    y_big = jax.block_until_ready(
        temp_print_shape_forward(x_big, force_kernel=True)
    )
    assert y_big.shape == x_big.shape
    assert y_big.dtype == x_big.dtype
    assert bool(jnp.all(y_big == x_big))

    print("KERNEL_OK")
</pallas_src>

<mosaic_0001>
module attributes {stable_mosaic.version = 11 : i64} {
  func.func @_hbm_copy_kernel(%arg0: memref<2x8x64x64xf32, #tpu.memory_space<any>>, %arg1: memref<2x8x64x64xf32, #tpu.memory_space<any>>, %arg2: memref<!tpu.dma_semaphore, #tpu.memory_space<semaphore_mem>>) attributes {dimension_semantics = [], scalar_prefetch = 0 : i64, scratch_operands = 1 : i64, tpu.core_type = #tpu.core_type<tc>} {
    tpu.enqueue_dma source(%arg0 : memref<2x8x64x64xf32, #tpu.memory_space<any>>) target(%arg1 : memref<2x8x64x64xf32, #tpu.memory_space<any>>) target_semaphore(%arg2 : memref<!tpu.dma_semaphore, #tpu.memory_space<semaphore_mem>>)
    tpu.wait_dma2 semaphore(%arg2 : memref<!tpu.dma_semaphore, #tpu.memory_space<semaphore_mem>>) src(%arg0 : memref<2x8x64x64xf32, #tpu.memory_space<any>>) dst(%arg1 : memref<2x8x64x64xf32, #tpu.memory_space<any>>)
    return
  }
}

</mosaic_0001>

<bundles_post_ra>
// kernel: tpu_custom_call.1
= control target key start
LH: loop header
LB: loop body
LE: loop exit
PB: predicated region body
PF: predicated region fallthrough
CT: control target
= control target key end

     0   :  { %s36_s6 = smov [#allocation2]   ;;  %s37_s7 = smov [#allocation3]   ;;  %s55_s0 = inlined_call_operand.hbm [shape: f32[2,8,64,64], index: 0, kind: input, shape index: {}]   ;;  %s56_s1 = inlined_call_operand.hbm [shape: f32[2,8,64,64], index: 1, kind: output, shape index: {}]  }
   0x1   :  { %s38_s8 = smov 0  }
   0x2   :  { %18 = dma.general %s55_s0, 16384, %s56_s1, %s36_s6, %s37_s7, [#allocation4], %s38_s8, 0  }
   0x3   :  { %34 = dma.done.wait [#allocation2], 16384 }
   0x4   :  { %35 = vsyncadd [#allocation2], 4294950912 }
   0x5   :  { %24 = vsyncmov [#allocation2] }
   0x8   :  { %s25_s13 = vpop.sfrf %24 }
   0x9   :  { %p30_p0 = scmp.ne.s32.totalorder %s25_s13, 0 }
   0xb   :  { %29 = shalt.err (%p30_p0)  }

</bundles_post_ra>
